<compile_context>
chip_gen: v7x
topology: tpu7x:2x2x1
jax: 0.10.0
libtpu: 0.0.40
codegen_flags: <defaults>
</compile_context>

<pallas_src>
import jax
import jax.numpy as jnp
from jax.experimental import pallas as pl
from jax.experimental.pallas import tpu as pltpu

IN_DIM = (400 // 30) * (800 // 30)   # 13 * 26 = 338
H1 = 256
H2 = 128
OUT_DIM = 4


def _round_up(n, m):
    return ((n + m - 1) // m) * m


def _compute_tile(B, max_tb):
    """Equalized batch tile: multiple of 8, >=2 tiles when B >= 16 (v7x megacore)."""
    n_tiles = max(pl.cdiv(B, max_tb), 2 if B >= 16 else 1)
    tb = max(_round_up(pl.cdiv(B, n_tiles), 8), 8)
    return tb


def tetris_mlp_kernel(x_ref, w1_ref, b1_ref, w2_ref, b2_ref, w3_ref, b3_ref, o_ref):
    # x tile: [TB, 338] f32 -> cast to bf16 for the MXU; accumulate every matmul in f32.
    x = x_ref[...].astype(jnp.bfloat16)

    h1 = jnp.dot(x, w1_ref[...], preferred_element_type=jnp.float32) + b1_ref[...]
    h1 = jnp.maximum(h1, 0.0).astype(jnp.bfloat16)

    h2 = jnp.dot(h1, w2_ref[...], preferred_element_type=jnp.float32) + b2_ref[...]
    h2 = jnp.maximum(h2, 0.0).astype(jnp.bfloat16)

    out = jnp.dot(h2, w3_ref[...], preferred_element_type=jnp.float32) + b3_ref[...]
    o_ref[...] = out.astype(o_ref.dtype)


def pack_params(params):
    """One-time repack of PyTorch-layout [out, in] weights to kernel layout.

    Call once per parameter set and reuse the result across forward calls.
    """
    return {
        "w1": params["fc1_w"].T.astype(jnp.bfloat16),                 # [338, 256]
        "b1": params["fc1_b"].reshape(1, H1).astype(jnp.float32),     # [1, 256]
        "w2": params["fc2_w"].T.astype(jnp.bfloat16),                 # [256, 128]
        "b2": params["fc2_b"].reshape(1, H2).astype(jnp.float32),     # [1, 128]
        "w3": params["fc3_w"].T.astype(jnp.bfloat16),                 # [128, 4]
        "b3": params["fc3_b"].reshape(1, OUT_DIM).astype(jnp.float32) # [1, 4]
    }


def tetris_net_forward(x, packed, *, max_tb=2048):
    """x: [B, 338] float32. packed: output of pack_params().

    Returns [B, 4] float32 logits (Q-values for the 4 Tetris actions).
    """
    B = x.shape[0]
    tb = _compute_tile(B, max_tb)
    B_pad = _round_up(B, tb)

    # Zero-pad only the final partial batch tile (no-op when B is a tile multiple).
    if B_pad != B:
        x = jnp.pad(x, ((0, B_pad - B), (0, 0)))

    grid = (B_pad // tb,)

    out = pl.pallas_call(
        tetris_mlp_kernel,
        out_shape=jax.ShapeDtypeStruct((B_pad, OUT_DIM), jnp.float32),
        grid=grid,
        in_specs=[
            pl.BlockSpec((tb, IN_DIM), lambda i: (i, 0)),     # x: streamed over batch
            pl.BlockSpec((IN_DIM, H1), lambda i: (0, 0)),     # weights/biases: resident
            pl.BlockSpec((1, H1), lambda i: (0, 0)),
            pl.BlockSpec((H1, H2), lambda i: (0, 0)),
            pl.BlockSpec((1, H2), lambda i: (0, 0)),
            pl.BlockSpec((H2, OUT_DIM), lambda i: (0, 0)),
            pl.BlockSpec((1, OUT_DIM), lambda i: (0, 0)),
        ],
        out_specs=pl.BlockSpec((tb, OUT_DIM), lambda i: (i, 0)),
        compiler_params=pltpu.CompilerParams(
            dimension_semantics=("parallel",),                # megacore sharding on v7x
            vmem_limit_bytes=32 << 20,                        # covers v5e's 16 MiB default
        ),
    )(x, packed["w1"], packed["b1"], packed["w2"], packed["b2"],
      packed["w3"], packed["b3"])

    return out[:B]


def init_params(key):
    """Deterministic init matching PyTorch nn.Linear default (uniform +/- 1/sqrt(fan_in))."""
    ks = jax.random.split(key, 6)

    def linear_init(kw, kb, fan_in, fan_out):
        bound = 1.0 / jnp.sqrt(fan_in)
        w = jax.random.uniform(kw, (fan_out, fan_in), jnp.float32, -bound, bound)
        b = jax.random.uniform(kb, (fan_out,), jnp.float32, -bound, bound)
        return w, b

    fc1_w, fc1_b = linear_init(ks[0], ks[1], IN_DIM, H1)
    fc2_w, fc2_b = linear_init(ks[2], ks[3], H1, H2)
    fc3_w, fc3_b = linear_init(ks[4], ks[5], H2, OUT_DIM)
    return {
        "fc1_w": fc1_w, "fc1_b": fc1_b,
        "fc2_w": fc2_w, "fc2_b": fc2_b,
        "fc3_w": fc3_w, "fc3_b": fc3_b,
    }


def reference_forward(x, params):
    """Pure-JAX f32 reference (mirrors the PyTorch forward exactly)."""
    h1 = jnp.maximum(x @ params["fc1_w"].T + params["fc1_b"], 0.0)
    h2 = jnp.maximum(h1 @ params["fc2_w"].T + params["fc2_b"], 0.0)
    return h2 @ params["fc3_w"].T + params["fc3_b"]


if __name__ == "__main__":
    key = jax.random.PRNGKey(0)
    k_params, k_x1, k_x2, k_x3 = jax.random.split(key, 4)

    params = init_params(k_params)
    packed = pack_params(params)   # hoisted weight repack: done once, reused per call

    # Small canonical case: batch of 2 flattened 13x26 Tetris grids (single tile).
    B = 2
    x = jax.random.uniform(k_x1, (B, IN_DIM), jnp.float32)
    out = jax.block_until_ready(tetris_net_forward(x, packed))
    ref = reference_forward(x, params)
    assert out.shape == (B, OUT_DIM), out.shape
    # bf16 weights/activations with f32 accumulation -> loosened tolerance vs f32 ref.
    assert jnp.allclose(out, ref, atol=3e-2, rtol=3e-2), float(jnp.max(jnp.abs(out - ref)))

    # Ragged batch exercising multiple grid tiles + partial-tile zero padding.
    B2 = 19
    x2 = jax.random.uniform(k_x2, (B2, IN_DIM), jnp.float32)
    out2 = jax.block_until_ready(tetris_net_forward(x2, packed, max_tb=8))
    ref2 = reference_forward(x2, params)
    assert out2.shape == (B2, OUT_DIM), out2.shape
    assert jnp.allclose(out2, ref2, atol=3e-2, rtol=3e-2), float(jnp.max(jnp.abs(out2 - ref2)))

    # Medium batch with default tiling: >=2 equalized tiles (v7x megacore path).
    B3 = 100
    x3 = jax.random.uniform(k_x3, (B3, IN_DIM), jnp.float32)
    out3 = jax.block_until_ready(tetris_net_forward(x3, packed))
    ref3 = reference_forward(x3, params)
    assert out3.shape == (B3, OUT_DIM), out3.shape
    assert jnp.allclose(out3, ref3, atol=3e-2, rtol=3e-2), float(jnp.max(jnp.abs(out3 - ref3)))

    print("KERNEL_OK")
</pallas_src>

<mosaic_0001>
module attributes {stable_mosaic.version = 11 : i64} {
  func.func @tetris_mlp_kernel(%arg0: i32, %arg1: memref<8x338xf32, #tpu.memory_space<vmem>>, %arg2: memref<338x256xbf16, #tpu.memory_space<vmem>>, %arg3: memref<1x256xf32, #tpu.memory_space<vmem>>, %arg4: memref<256x128xbf16, #tpu.memory_space<vmem>>, %arg5: memref<1x128xf32, #tpu.memory_space<vmem>>, %arg6: memref<128x4xbf16, #tpu.memory_space<vmem>>, %arg7: memref<1x4xf32, #tpu.memory_space<vmem>>, %arg8: memref<8x4xf32, #tpu.memory_space<vmem>>) attributes {dimension_semantics = [#tpu.dimension_semantics<parallel>], iteration_bounds = array<i64: 1>, scalar_prefetch = 0 : i64, scratch_operands = 0 : i64, tpu.core_type = #tpu.core_type<tc>, window_params = [{transform_indices = @transform_0, window_bounds = array<i64: 8, 338>}, {pipeline_mode = #tpu.pipeline_mode<synchronous>, transform_indices = @transform_1, window_bounds = array<i64: 338, 256>}, {pipeline_mode = #tpu.pipeline_mode<synchronous>, transform_indices = @transform_2, window_bounds = array<i64: 1, 256>}, {pipeline_mode = #tpu.pipeline_mode<synchronous>, transform_indices = @transform_3, window_bounds = array<i64: 256, 128>}, {pipeline_mode = #tpu.pipeline_mode<synchronous>, transform_indices = @transform_4, window_bounds = array<i64: 1, 128>}, {pipeline_mode = #tpu.pipeline_mode<synchronous>, transform_indices = @transform_5, window_bounds = array<i64: 128, 4>}, {pipeline_mode = #tpu.pipeline_mode<synchronous>, transform_indices = @transform_6, window_bounds = array<i64: 1, 4>}, {transform_indices = @transform_7, window_bounds = array<i64: 8, 4>}]} {
    %c0 = arith.constant 0 : index
    %c0_0 = arith.constant 0 : index
    %0 = vector.load %arg1[%c0, %c0_0] : memref<8x338xf32, #tpu.memory_space<vmem>>, vector<8x338xf32>
    %1 = arith.truncf %0 : vector<8x338xf32> to vector<8x338xbf16>
    %c0_1 = arith.constant 0 : index
    %c0_2 = arith.constant 0 : index
    %2 = vector.load %arg2[%c0_1, %c0_2] : memref<338x256xbf16, #tpu.memory_space<vmem>>, vector<338x256xbf16>
    %cst = arith.constant dense<0.000000e+00> : vector<8x256xf32>
    %3 = tpu.matmul %1, %2, %cst {dimension_numbers = #tpu.dot_dimension_numbers<[1], [0], [0], [1], [0, 0, 1, 1], [], []>} : vector<8x338xbf16>, vector<338x256xbf16>, vector<8x256xf32> -> vector<8x256xf32>
    %c0_3 = arith.constant 0 : index
    %c0_4 = arith.constant 0 : index
    %4 = vector.load %arg3[%c0_3, %c0_4] : memref<1x256xf32, #tpu.memory_space<vmem>>, vector<1x256xf32>
    %5 = vector.broadcast %4 : vector<1x256xf32> to vector<8x256xf32>
    %6 = arith.addf %3, %5 : vector<8x256xf32>
    %cst_5 = arith.constant 0.000000e+00 : f32
    %7 = vector.broadcast %cst_5 : f32 to vector<8x256xf32>
    %8 = arith.maximumf %6, %7 : vector<8x256xf32>
    %9 = arith.truncf %8 : vector<8x256xf32> to vector<8x256xbf16>
    %c0_6 = arith.constant 0 : index
    %c0_7 = arith.constant 0 : index
    %10 = vector.load %arg4[%c0_6, %c0_7] : memref<256x128xbf16, #tpu.memory_space<vmem>>, vector<256x128xbf16>
    %cst_8 = arith.constant dense<0.000000e+00> : vector<8x128xf32>
    %11 = tpu.matmul %9, %10, %cst_8 {dimension_numbers = #tpu.dot_dimension_numbers<[1], [0], [0], [1], [0, 0, 1, 1], [], []>} : vector<8x256xbf16>, vector<256x128xbf16>, vector<8x128xf32> -> vector<8x128xf32>
    %c0_9 = arith.constant 0 : index
    %c0_10 = arith.constant 0 : index
    %12 = vector.load %arg5[%c0_9, %c0_10] : memref<1x128xf32, #tpu.memory_space<vmem>>, vector<1x128xf32>
    %13 = vector.broadcast %12 : vector<1x128xf32> to vector<8x128xf32>
    %14 = arith.addf %11, %13 : vector<8x128xf32>
    %cst_11 = arith.constant 0.000000e+00 : f32
    %15 = vector.broadcast %cst_11 : f32 to vector<8x128xf32>
    %16 = arith.maximumf %14, %15 : vector<8x128xf32>
    %17 = arith.truncf %16 : vector<8x128xf32> to vector<8x128xbf16>
    %c0_12 = arith.constant 0 : index
    %c0_13 = arith.constant 0 : index
    %18 = vector.load %arg6[%c0_12, %c0_13] : memref<128x4xbf16, #tpu.memory_space<vmem>>, vector<128x4xbf16>
    %cst_14 = arith.constant dense<0.000000e+00> : vector<8x4xf32>
    %19 = tpu.matmul %17, %18, %cst_14 {dimension_numbers = #tpu.dot_dimension_numbers<[1], [0], [0], [1], [0, 0, 1, 1], [], []>} : vector<8x128xbf16>, vector<128x4xbf16>, vector<8x4xf32> -> vector<8x4xf32>
    %c0_15 = arith.constant 0 : index
    %c0_16 = arith.constant 0 : index
    %20 = vector.load %arg7[%c0_15, %c0_16] : memref<1x4xf32, #tpu.memory_space<vmem>>, vector<1x4xf32>
    %21 = vector.broadcast %20 : vector<1x4xf32> to vector<8x4xf32>
    %22 = arith.addf %19, %21 : vector<8x4xf32>
    %c0_17 = arith.constant 0 : index
    %c0_18 = arith.constant 0 : index
    %23 = vector.load %arg8[%c0_17, %c0_18] : memref<8x4xf32, #tpu.memory_space<vmem>>, vector<8x4xf32>
    tpu.vector_store %arg8[%c0_17, %c0_18], %22 {strides = array<i32>} : memref<8x4xf32, #tpu.memory_space<vmem>>, vector<8x4xf32>,
    return
  }
  func.func @transform_0(%arg0: i32) -> (i32, i32) {
    %c0_i32 = arith.constant 0 : i32
    %c0_i32_0 = arith.constant 0 : i32
    return %arg0, %c0_i32 : i32, i32
  }
  func.func @transform_1(%arg0: i32) -> (i32, i32) {
    %c0_i32 = arith.constant 0 : i32
    %c0_i32_0 = arith.constant 0 : i32
    %c0_i32_1 = arith.constant 0 : i32
    return %c0_i32, %c0_i32_0 : i32, i32
  }
  func.func @transform_2(%arg0: i32) -> (i32, i32) {
    %c0_i32 = arith.constant 0 : i32
    %c0_i32_0 = arith.constant 0 : i32
    %c0_i32_1 = arith.constant 0 : i32
    return %c0_i32, %c0_i32_0 : i32, i32
  }
  func.func @transform_3(%arg0: i32) -> (i32, i32) {
    %c0_i32 = arith.constant 0 : i32
    %c0_i32_0 = arith.constant 0 : i32
    %c0_i32_1 = arith.constant 0 : i32
    return %c0_i32, %c0_i32_0 : i32, i32
  }
  func.func @transform_4(%arg0: i32) -> (i32, i32) {
    %c0_i32 = arith.constant 0 : i32
    %c0_i32_0 = arith.constant 0 : i32
    %c0_i32_1 = arith.constant 0 : i32
    return %c0_i32, %c0_i32_0 : i32, i32
  }
  func.func @transform_5(%arg0: i32) -> (i32, i32) {
    %c0_i32 = arith.constant 0 : i32
    %c0_i32_0 = arith.constant 0 : i32
    %c0_i32_1 = arith.constant 0 : i32
    return %c0_i32, %c0_i32_0 : i32, i32
  }
  func.func @transform_6(%arg0: i32) -> (i32, i32) {
    %c0_i32 = arith.constant 0 : i32
    %c0_i32_0 = arith.constant 0 : i32
    %c0_i32_1 = arith.constant 0 : i32
    return %c0_i32, %c0_i32_0 : i32, i32
  }
  func.func @transform_7(%arg0: i32) -> (i32, i32) {
    %c0_i32 = arith.constant 0 : i32
    %c0_i32_0 = arith.constant 0 : i32
    return %arg0, %c0_i32 : i32, i32
  }
}

</mosaic_0001>

<bundles_post_ra>
// kernel: tpu_custom_call.1
= control target key start
LH: loop header
LB: loop body
LE: loop exit
PB: predicated region body
PF: predicated region fallthrough
CT: control target
= control target key end

     0   :  { %12 = vsyncpa [#allocation3], 0  ;;  %s1117_s0 = inlined_call_operand.vmem [shape: f32[8,338], index: 0, kind: input, shape index: {}]   ;;  %s1118_s1 = inlined_call_operand.hbm [shape: bf16[338,256], index: 1, kind: input, shape index: {}]   ;;  %s1119_s2 = inlined_call_operand.vmem [shape: f32[1,256], index: 2, kind: input, shape index: {}]   ;;  %s1120_s3 = inlined_call_operand.hbm [shape: bf16[256,128], index: 3, kind: input, shape index: {}]   ;;  %s1121_s4 = inlined_call_operand.vmem [shape: f32[1,128], index: 4, kind: input, shape index: {}]   ;;  %s1122_s5 = inlined_call_operand.vmem [shape: bf16[128,4], index: 5, kind: input, shape index: {}]   ;;  %s1123_s6 = inlined_call_operand.vmem [shape: f32[1,4], index: 6, kind: input, shape index: {}]   ;;  %s1124_s7 = inlined_call_operand.vmem [shape: f32[8,4], index: 7, kind: output, shape index: {}]  }
   0x1   :  { %13 = vsyncpa [#allocation5], 0  ;;  %s999_s24 = smov [#allocation2]   ;;  %s951_s28 = scalar_lea.hbm %s1118_s1, 5504 }
   0x2   :  { %s21_s25 = sshll.u32 %s999_s24, 4  ;;  %p952_p0 = scmp.ne.s32.totalorder %s1118_s1, %s951_s28  ;;  %s22_s25 = int_to_ptr.vmem [resolvable:$true] %s21_s25 }
   0x3   :  { %p955_p1 = scmp.lt.u32.totalorder %s951_s28, %s1118_s1 }
   0x5   :  { %p957_p2 = pnand %p955_p1, %p952_p0 }
   0x7   :  { %960 = shalt.err (!%p957_p2)
}
   0x8   :  { %s961_s10 = scalar_lea.vmem %s22_s25, 5504  ;;  %p966_p4 = scmp.lt.s32.totalorder %s22_s25, %s22_s25 }
   0x9   :  { %p962_p3 = scmp.ne.s32.totalorder %s22_s25, %s961_s10  ;;  %p967_p5 = scmp.lt.s32.totalorder %s961_s10, %s961_s10 }
   0xb   :  { %p968_p6 = por %p967_p5, %p966_p4 }
   0xd   :  { %p969_p7 = pnand %p968_p6, %p962_p3 }
   0xf   :  { %972 = shalt.err (!%p969_p7)
}
  0x10   :  { %s1000_s11 = smov 128   ;;  %s1001_s12 = smov 8  }
  0x11   :  { %27 = dma.hbm_to_vmem [thread:$0]  %s1118_s1, 5504, %s22_s25, [#allocation3], %s1000_s11, %s1000_s11, %s1001_s12  }
  0x12   :  { %s1002_s15 = smov [#allocation4]   ;;  %s973_s19 = scalar_lea.hbm %s1120_s3, 2048 }
  0x13   :  { %s35_s16 = sshll.u32 %s1002_s15, 4  ;;  %p974_p8 = scmp.ne.s32.totalorder %s1120_s3, %s973_s19  ;;  %s36_s16 = int_to_ptr.vmem [resolvable:$true] %s35_s16 }
  0x14   :  { %p977_p9 = scmp.lt.u32.totalorder %s973_s19, %s1120_s3 }
  0x16   :  { %p979_p10 = pnand %p977_p9, %p974_p8 }
  0x18   :  { %982 = shalt.err (!%p979_p10)
}
  0x19   :  { %s983_s24 = scalar_lea.vmem %s36_s16, 2048  ;;  %p988_p12 = scmp.lt.s32.totalorder %s36_s16, %s36_s16 }
  0x1a   :  { %p984_p11 = scmp.ne.s32.totalorder %s36_s16, %s983_s24  ;;  %p989_p13 = scmp.lt.s32.totalorder %s983_s24, %s983_s24 }
  0x1c   :  { %p990_p0 = por %p989_p13, %p988_p12 }
  0x1e   :  { %p991_p1 = pnand %p990_p0, %p984_p11 }
  0x20   :  { %994 = shalt.err (!%p991_p1)
}
  0x21   :  { %s1003_s1 = smov 64   ;;  %s1004_s25 = smov 4  }
  0x22   :  { %41 = dma.hbm_to_vmem [thread:$0]  %s1120_s3, 2048, %s36_s16, [#allocation5], %s1003_s1, %s1003_s1, %s1004_s25  }
  0x23   :  { %995 = dma.done.wait [#allocation3], 5504  }
  0x24   :  { %996 = vsyncadd [#allocation3], 4294961792 }
  0x25   :  { %997 = dma.done.wait [#allocation5], 2048  }
  0x26   :  { %998 = vsyncadd [#allocation5], 4294965248  ;;  %v862_v0 = vld [vmem:[#allocation2 + $0x4] ss:$8 sps:$4 sm:$0xff]   ;;  %v864_v1 = vld [vmem:[#allocation2] ss:$8 sps:$4 sm:$0xff]  }
  0x27   :  { %342 = vmatprep.subr.bf16.mxu0 %v862_v0  ;;  %v865_v2 = vld [vmem:[#allocation2 + $0x14] ss:$8 sps:$4 sm:$0xff]   ;;  %v867_v3 = vld [vmem:[#allocation2 + $0x10] ss:$8 sps:$4 sm:$0xff]   ;;  %v868_v4 = vld [vmem:[#allocation2 + $0x24] ss:$8 sps:$4 sm:$0xff]  }
  0x28   :  { %343 = vmatpush1.bf16.msra.mxu0 %v864_v1  ;;  %v870_v5 = vld [vmem:[#allocation2 + $0x20] ss:$8 sps:$4 sm:$0xff]   ;;  %v871_v6 = vld [vmem:[#allocation2 + $0x34] ss:$8 sps:$4 sm:$0xff]   ;;  %v873_v7 = vld [vmem:[#allocation2 + $0x30] ss:$8 sps:$4 sm:$0xff]  }
  0x29   :  { %344 = vmatprep.subr.bf16.mxu0 %v865_v2  ;;  %v874_v8 = vld [vmem:[#allocation2 + $0x44] ss:$8 sps:$4 sm:$0xff]   ;;  %v876_v9 = vld [vmem:[#allocation2 + $0x40] ss:$8 sps:$4 sm:$0xff]   ;;  %v877_v10 = vld [vmem:[#allocation2 + $0x54] ss:$8 sps:$4 sm:$0xff]  }
  0x2a   :  { %v879_v11 = vld [vmem:[#allocation2 + $0x50] ss:$8 sps:$4 sm:$0xff]   ;;  %v880_v12 = vld [vmem:[#allocation2 + $0x64] ss:$8 sps:$4 sm:$0xff]   ;;  %v882_v15 = vld [vmem:[#allocation2 + $0x60] ss:$8 sps:$4 sm:$0xff]  }
  0x2b   :  { %v56_v13 = vld [vmem:[%s1117_s0 + $0x8] sm:$0xff]  ;;  %v883_v16 = vld [vmem:[#allocation2 + $0x74] ss:$8 sps:$4 sm:$0xff]   ;;  %v885_v17 = vld [vmem:[#allocation2 + $0x70] ss:$8 sps:$4 sm:$0xff]   ;;  %v1005_v52 = vmov 0  }
  0x2c   :  { %345 = vmatpush1.bf16.msra.mxu0 %v867_v3  ;;  %v59_v14 = vpack.c.bf16 %v56_v13, %v56_v13  ;;  %v886_v18 = vld [vmem:[#allocation2 + $0x84] ss:$8 sps:$4 sm:$0xff]   ;;  %v888_v19 = vld [vmem:[#allocation2 + $0x80] ss:$8 sps:$4 sm:$0xff]   ;;  %v889_v20 = vld [vmem:[#allocation2 + $0x94] ss:$8 sps:$4 sm:$0xff]  }
  0x2d   :  { %346 = vmatprep.subr.bf16.mxu0 %v868_v4  ;;  %v927_v21 = vld [vmem:[#allocation4 + $0x40] sm:$0xff]   ;;  %v929_v23 = vld [vmem:[#allocation4 + $0x48] sm:$0xff]   ;;  %v931_v25 = vld [vmem:[#allocation4 + $0x50] sm:$0xff]   ;;  %vm335_vm0 = vcmask 1040384   ;;  %vm331_vm1 = vcmask 670720   ;;  %vm1007_vm2 = vmmov 0  }
  0x2e   :  { %374 = vmatprep.mubr.bf16.mxu0 %v59_v14  ;;  %v928_v22 = vld [vmem:[#allocation4] sm:$0xff]   ;;  %796 = vmatprep.subr.bf16.mxu1 %v927_v21  ;;  %v930_v24 = vld [vmem:[#allocation4 + $0x8] sm:$0xff]   ;;  %v932_v28 = vld [vmem:[#allocation4 + $0x10] sm:$0xff]   ;;  %vm716_vm3 = vcmask 31744  }
  0x2f   :  { %797 = vmatpush3.bf16.msra.mxu1 %v928_v22  ;;  %v891_v26 = vld [vmem:[#allocation2 + $0x90] ss:$8 sps:$4 sm:$0xff]   ;;  %v892_v27 = vld [vmem:[#allocation2 + $0xa4] ss:$8 sps:$4 sm:$0xff]   ;;  %v894_v30 = vld [vmem:[#allocation2 + $0xa0] ss:$8 sps:$4 sm:$0xff]  }
  0x30   :  { %347 = vmatpush1.bf16.msra.mxu0 %v870_v5  ;;  %798 = vmatprep.subr.bf16.mxu1 %v929_v23  ;;  %v933_v29 = vld [vmem:[#allocation4 + $0x58] sm:$0xff]   ;;  %v935_v34 = vld [vmem:[#allocation4 + $0x60] sm:$0xff]   ;;  %v898_v35 = vld [vmem:[#allocation2 + $0xc4] ss:$8 sps:$4 sm:$0xff]   ;;  %v1006_v5 = vmov 0.0  }
  0x31   :  { %348 = vmatprep.subr.bf16.mxu0 %v871_v6  ;;  %v895_v31 = vld [vmem:[#allocation2 + $0xb4] ss:$8 sps:$4 sm:$0xff]   ;;  %v897_v32 = vld [vmem:[#allocation2 + $0xb0] ss:$8 sps:$4 sm:$0xff]   ;;  %v937_v37 = vld [vmem:[#allocation4 + $0x68] sm:$0xff]   ;;  %v106_v6 = vlaneseq }
  0x32   :  { %v934_v33 = vld [vmem:[#allocation4 + $0x18] sm:$0xff]   ;;  %v936_v36 = vld [vmem:[#allocation4 + $0x20] sm:$0xff]   ;;  %v900_v38 = vld [vmem:[#allocation2 + $0xc0] ss:$8 sps:$4 sm:$0xff]  }
  0x33   :  { %799 = vmatpush3.bf16.msra.mxu1 %v930_v24  ;;  %v901_v39 = vld [vmem:[#allocation2 + $0xd4] ss:$8 sps:$4 sm:$0xff]   ;;  %v938_v40 = vld [vmem:[#allocation4 + $0x28] sm:$0xff]   ;;  %v903_v41 = vld [vmem:[#allocation2 + $0xd0] ss:$8 sps:$4 sm:$0xff]  }
  0x34   :  { %349 = vmatpush1.bf16.msra.mxu0 %v873_v7  ;;  %800 = vmatprep.subr.bf16.mxu1 %v931_v25  ;;  %v904_v42 = vld [vmem:[#allocation2 + $0xe4] ss:$8 sps:$4 sm:$0xff]   ;;  %v906_v43 = vld [vmem:[#allocation2 + $0xe0] ss:$8 sps:$4 sm:$0xff]   ;;  %v907_v44 = vld [vmem:[#allocation2 + $0xf4] ss:$8 sps:$4 sm:$0xff]  }
  0x35   :  { %350 = vmatprep.subr.bf16.mxu0 %v874_v8  ;;  %v909_v45 = vld [vmem:[#allocation2 + $0xf0] ss:$8 sps:$4 sm:$0xff]   ;;  %v55_v46 = vld [vmem:[%s1117_s0] sm:$0xff]  ;;  %v915_v50 = vld [vmem:[#allocation2 + $0x114] ss:$8 sps:$4 sm:$0xff]   ;;  %v107_v7 = vshrl.u32 %v106_v6, 7 }
  0x36   :  { %v912_v47 = vld [vmem:[#allocation2 + $0x104] ss:$8 sps:$4 sm:$0xff]   ;;  %v58_v48 = vpack.c.bf16 %v55_v46, %v55_v46  ;;  %v910_v49 = vld [vmem:[#allocation2 + $0x100] ss:$8 sps:$4 sm:$0xff]   ;;  %v913_v51 = vld [vmem:[#allocation2 + $0x110] ss:$8 sps:$4 sm:$0xff]  }
  0x37   :  { %801 = vmatpush3.bf16.msra.mxu1 %v932_v28  ;;  %v918_v53 = vld [vmem:[#allocation2 + $0x124] ss:$8 sps:$4 sm:$0xff]   ;;  %v916_v54 = vld [vmem:[#allocation2 + $0x120] ss:$8 sps:$4 sm:$0xff]   ;;  %v921_v55 = vld [vmem:[#allocation2 + $0x134] ss:$8 sps:$4 sm:$0xff]  }
  0x38   :  { %351 = vmatpush1.bf16.msra.mxu0 %v876_v9  ;;  %802 = vmatprep.subr.bf16.mxu1 %v933_v29  ;;  %v919_v56 = vld [vmem:[#allocation2 + $0x130] ss:$8 sps:$4 sm:$0xff]   ;;  %v924_v57 = vld [vmem:[#allocation2 + $0x144] ss:$8 sps:$4 sm:$0xff]   ;;  %v922_v59 = vld [vmem:[#allocation2 + $0x140] ss:$8 sps:$4 sm:$0xff]  }
  0x39   :  { %352 = vmatprep.subr.bf16.mxu0 %v877_v10  ;;  %v103_v58 = vld [vmem:[#allocation2 + $0x150] sm:$0x11]  ;;  %v939_v1 = vld [vmem:[#allocation4 + $0x70] sm:$0xff]   ;;  %v108_v8 = vsub.s32 0, %v107_v7  ;;  %v104_v9 = vld [vmem:[%s1119_s2] sm:$0x3] }
  0x3a   :  { %v767_v60 = vcombine.high %v103_v58, %v103_v58  ;;  %v766_v61 = vcombine.low %v103_v58, %v103_v58  ;;  %v57_v62 = vld [vmem:[%s1117_s0 + $0x10] sm:$0xff]  ;;  %v940_v2 = vld [vmem:[#allocation4 + $0x30] sm:$0xff]   ;;  %v112_v10 = vsub.s32 1, %v107_v7  ;;  %v943_v22 = vld [vmem:[%s1122_s5] sm:$0xff]  }
  0x3b   :  { %803 = vmatpush3.bf16.msra.mxu1 %v934_v33  ;;  %v60_v0 = vpack.c.bf16 %v57_v62, %v57_v62  ;;  %v941_v3 = vld [vmem:[#allocation4 + $0x78] sm:$0xff]   ;;  %v944_v24 = vld [vmem:[%s1122_s5 + $0x8] sm:$0xff]  }
  0x3c   :  { %353 = vmatpush1.bf16.msra.mxu0 %v879_v11  ;;  %804 = vmatprep.subr.bf16.mxu1 %v935_v34  ;;  %v337_v63 = vsel %vm335_vm0, %v766_v61, 0  ;;  %v942_v4 = vld [vmem:[#allocation4 + $0x38] sm:$0xff]   ;;  %v109_v11 = vrot.slane %v104_v9, %v108_v8  ;;  %v948_v28 = vld [vmem:[%s1122_s5 + $0x28] sm:$0xff]  }
  0x3d   :  { %354 = vmatprep.subr.bf16.mxu0 %v880_v12  ;;  %v113_v12 = vrot.slane %v104_v9, %v112_v10  ;;  %v945_v25 = vld [vmem:[%s1122_s5 + $0x10] sm:$0xff]  }
  0x3e   :  { %v949_v29 = vld [vmem:[%s1122_s5 + $0x30] sm:$0xff]  }
  0x3f   :  { %805 = vmatpush3.bf16.msra.mxu1 %v936_v36 }
  0x40   :  { %355 = vmatpush1.bf16.msra.mxu0 %v882_v15  ;;  %806 = vmatprep.subr.bf16.mxu1 %v937_v37 }
  0x41   :  { %356 = vmatprep.subr.bf16.mxu0 %v883_v16 }
  0x43   :  { %807 = vmatpush3.bf16.msra.mxu1 %v938_v40  ;;  %v787_v40 = vld [vmem:[%s1123_s6] ss:$0 sm:$0xff] }
  0x44   :  { %357 = vmatpush1.bf16.msra.mxu0 %v885_v17  ;;  %808 = vmatprep.subr.bf16.mxu1 %v939_v1 }
  0x45   :  { %358 = vmatprep.subr.bf16.mxu0 %v886_v18 }
  0x47   :  { %809 = vmatpush3.bf16.msra.mxu1 %v940_v2 }
  0x48   :  { %359 = vmatpush1.bf16.msra.mxu0 %v888_v19  ;;  %810 = vmatprep.subr.bf16.mxu1 %v941_v3 }
  0x49   :  { %360 = vmatprep.subr.bf16.mxu0 %v889_v20 }
  0x4b   :  { %811 = vmatpush3.bf16.msra.mxu1 %v942_v4 }
  0x4c   :  { %361 = vmatpush1.bf16.msra.mxu0 %v891_v26  ;;  %827 = vmatprep.subr.bf16.mxu1 %v1006_v5  ;;  %v946_v26 = vld [vmem:[%s1122_s5 + $0x18] sm:$0xff]  }
  0x4d   :  { %362 = vmatprep.subr.bf16.mxu0 %v892_v27  ;;  %v947_v27 = vld [vmem:[%s1122_s5 + $0x20] sm:$0xff]  }
  0x50   :  { %363 = vmatpush1.bf16.msra.mxu0 %v894_v30  ;;  %v950_v30 = vld [vmem:[%s1122_s5 + $0x38] sm:$0xff]  }
  0x51   :  { %364 = vmatprep.subr.bf16.mxu0 %v895_v31 }
  0x54   :  { %365 = vmatpush1.bf16.msra.mxu0 %v897_v32  ;;  %v770_v32 = vld [vmem:[%s1121_s4] ss:$0 sm:$0xff] }
  0x55   :  { %366 = vmatprep.subr.bf16.mxu0 %v898_v35 }
  0x58   :  { %367 = vmatpush1.bf16.msra.mxu0 %v900_v38 }
  0x59   :  { %368 = vmatprep.subr.bf16.mxu0 %v901_v39 }
  0x5c   :  { %369 = vmatpush1.bf16.msra.mxu0 %v903_v41 }
  0x5d   :  { %370 = vmatprep.subr.bf16.mxu0 %v904_v42 }
  0x60   :  { %371 = vmatpush1.bf16.msra.mxu0 %v906_v43 }
  0x61   :  { %372 = vmatprep.subr.bf16.mxu0 %v907_v44 }
  0x64   :  { %373 = vmatpush1.bf16.msra.mxu0 %v909_v45 }
  0x65   :  { %383 = vmatprep.subr.bf16.mxu0 %v912_v47 }
  0x67   :  { %375 = vmatmul.mubr.bf16.vlgmr.msra.gmra.mrb[0].mxu0 %v58_v48 }
  0x68   :  { %384 = vmatpush1.bf16.msra.mxu0 %v910_v49  ;;  %415 = vmatprep.mubr.bf16.mxu0 %v1005_v52 }
  0x69   :  { %385 = vmatprep.subr.bf16.mxu0 %v915_v50 }
  0x6c   :  { %386 = vmatpush1.bf16.msra.mxu0 %v913_v51 }
  0x6d   :  { %387 = vmatprep.subr.bf16.mxu0 %v918_v53 }
  0x70   :  { %388 = vmatpush1.bf16.msra.mxu0 %v916_v54 }
  0x71   :  { %389 = vmatprep.subr.bf16.mxu0 %v921_v55 }
  0x74   :  { %390 = vmatpush1.bf16.msra.mxu0 %v919_v56 }
  0x75   :  { %391 = vmatprep.subr.bf16.mxu0 %v924_v57 }
  0x78   :  { %392 = vmatpush1.bf16.msra.mxu0 %v922_v59 }
  0x79   :  { %768 = vmatprep.subr.msk.bf16.mxu0 %vm335_vm0, %v767_v60 }
  0x7c   :  { %394 = vmatpush1.bf16.msra.mxu0 %v337_v63 }
  0x7f   :  { %769 = vmatmul.mubr.msk.bf16.vlgmr.msra.gmra.mrb[0].mxu0 %vm331_vm1, %v60_v0 }
 0x152   :  { %v417_v13 = vpop.f32.mrb[0].mxu0 }
 0x153   :  { %v847_v14 = vadd.f32 %v417_v13, %v109_v11  ;;  %v419_v15 = vpop.f32.mrb[1].mxu0 }
 0x154   :  { %v848_v16 = vadd.f32 %v419_v15, %v113_v12  ;;  %v421_v17 = vpop.f32.mrb[2].mxu0 }
 0x155   :  { %v424_v18 = vmax.f32 %v847_v14, 0.0  ;;  %v422_v19 = vpop.f32.mrb[3].mxu0 }
 0x156   :  { %v425_v20 = vmax.f32 %v848_v16, 0.0 }
 0x157   :  { %v426_v23 = vpack.c.bf16 %v424_v18, %v424_v18 }
 0x158   :  { %v427_v21 = vpack.c.bf16 %v425_v20, %v425_v20 }
 0x15a   :  { %595 = vmatprep.mubr.bf16.mxu1 %v427_v21 }
 0x15b   :  { %596 = vmatmul.mubr.bf16.vlgmr.msra.gmra.mrb[0].mxu1 %v426_v23 }
 0x15c   :  { %828 = vmatpush3.bf16.msra.mxu1 %v943_v22  ;;  %843 = vmatprep.mubr.msk.bf16.mxu1 %vm1007_vm2, %v1006_v5 }
 0x15d   :  { %829 = vmatprep.subr.bf16.mxu1 %v1006_v5 }
 0x160   :  { %830 = vmatpush3.bf16.msra.mxu1 %v944_v24 }
 0x161   :  { %831 = vmatprep.subr.bf16.mxu1 %v1006_v5 }
 0x164   :  { %832 = vmatpush3.bf16.msra.mxu1 %v945_v25 }
 0x165   :  { %833 = vmatprep.subr.bf16.mxu1 %v1006_v5 }
 0x168   :  { %834 = vmatpush3.bf16.msra.mxu1 %v946_v26 }
 0x169   :  { %835 = vmatprep.subr.bf16.mxu1 %v1006_v5 }
 0x16c   :  { %836 = vmatpush3.bf16.msra.mxu1 %v947_v27 }
 0x16d   :  { %837 = vmatprep.subr.bf16.mxu1 %v1006_v5 }
 0x170   :  { %838 = vmatpush3.bf16.msra.mxu1 %v948_v28 }
 0x171   :  { %839 = vmatprep.subr.bf16.mxu1 %v1006_v5 }
 0x174   :  { %840 = vmatpush3.bf16.msra.mxu1 %v949_v29 }
 0x175   :  { %841 = vmatprep.subr.bf16.mxu1 %v1006_v5 }
 0x178   :  { %842 = vmatpush3.bf16.msra.mxu1 %v950_v30 }
 0x22e   :  { %v812_v31 = vpop.f32.mrb[0].mxu1 }
 0x22f   :  { %v813_v33 = vpop.f32.mrb[1].mxu1 }
 0x230   :  { %v814_v34 = vadd.f32 %v813_v33, %v812_v31  ;;  %v815_v35 = vpop.f32.mrb[2].mxu1 }
 0x231   :  { %v816_v36 = vpop.f32.mrb[3].mxu1 }
 0x232   :  { %v598_v37 = vadd.f32 %v814_v34, %v770_v32 }
 0x234   :  { %v603_v38 = vmax.f32 %v598_v37, 0.0 }
 0x236   :  { %v604_v39 = vpack.c.bf16 %v603_v38, %v603_v38 }
 0x238   :  { %844 = vmatmul.mubr.bf16.vlgmr.msra.gmra.mrb[4].mxu1 %v604_v39 }
 0x30b   :  { %v710_v41 = vpop.f32.mrb[4].mxu1 }
 0x30c   :  { %v711_v42 = vadd.f32 %v787_v40, %v710_v41  ;;  %v845_v43 = vpop.f32.mrb[5].mxu1 }
 0x30d   :  { %v713_v44 = vpop.f32.mrb[6].mxu1 }
 0x30e   :  { %717 = vst.msk [vmem:[%s1124_s7] sm:$0xff] %vm716_vm3, %v711_v42  ;;  %v846_v45 = vpop.f32.mrb[7].mxu1 }
 0x30f   :  { %722 = vsyncpa [#allocation3], 1 }
 0x310   :  { %723 = vsyncpa [#allocation5], 1 }

</bundles_post_ra>
